<compile_context>
chip_gen: v6e
topology: v6e:2x2x1
jax: 0.10.0
libtpu: 0.0.40
codegen_flags: <defaults>
</compile_context>

<pallas_src>
import functools

import jax
import jax.numpy as jnp
from jax.experimental import pallas as pl
from jax.experimental.pallas import tpu as pltpu

HIDDEN_DIM = 50  # fixed in the module's __init__
_NEG_BIG = -1e30  # padded logit bias -> exp() == 0, softmax unaffected


def _round_up(x, m):
    return (x + m - 1) // m * m


def _subcluster_kernel(x_ref, ha_ref, colid_ref, w1_ref, b1_ref, w2_ref, b2_ref,
                       o_ref, *, K):
    # --- reshape_input: place X[i] in block hard_assign[i], zeros elsewhere ---
    x = x_ref[...]                                        # (TM, codes_dim) f32
    x_rep = jnp.concatenate([x] * K, axis=1)              # (TM, K*codes_dim)
    mask = colid_ref[...] == ha_ref[...]                  # (1,D) vs (TM,1) -> (TM,D)
    x_in = jnp.where(mask, x_rep, 0.0).astype(jnp.bfloat16)

    # --- fc1 + ReLU (bf16 MXU, f32 accumulate) ---
    h = jnp.dot(x_in, w1_ref[...], preferred_element_type=jnp.float32) + b1_ref[...]
    h = jnp.maximum(h, 0.0).astype(jnp.bfloat16)

    # --- fc2 (softmax_norm pre-folded into w2/b2; padded lanes biased to -1e30) ---
    logits = jnp.dot(h, w2_ref[...], preferred_element_type=jnp.float32) + b2_ref[...]

    # --- softmax over dim=1 (padded lanes contribute exp(-huge) == 0) ---
    m = jnp.max(logits, axis=1, keepdims=True)
    e = jnp.exp(logits - m)
    o_ref[...] = e * pl.reciprocal(jnp.sum(e, axis=1, keepdims=True), approx=True)


def prepare_params(params, *, K, codes_dim, softmax_norm):
    """Convert (in,out)-layout f32 params into kernel-ready padded bf16/f32 operands."""
    w1_t, b1, w2_t, b2 = params
    d_in = codes_dim * K
    h = HIDDEN_DIM * K
    out = 2 * K
    hpad = _round_up(h, 128)
    out_pad = _round_up(out, 128)

    # Zero-pad hidden dim (fc1 out cols / fc2 in rows): ReLU(0)=0, zero w2 rows -> inert.
    w1_p = jnp.zeros((d_in, hpad), jnp.float32).at[:, :h].set(w1_t)
    b1_p = jnp.zeros((1, hpad), jnp.float32).at[:, :h].set(b1)

    # Fold softmax_norm into fc2; pad output lanes (zero weights, -huge bias).
    w2_p = jnp.zeros((hpad, out_pad), jnp.float32).at[:h, :out].set(w2_t * softmax_norm)
    b2_p = jnp.full((1, out_pad), _NEG_BIG, jnp.float32).at[:, :out].set(b2 * softmax_norm)

    # Precomputed column-block ids (avoids per-step iota // codes_dim in the kernel).
    colid = (jnp.arange(d_in, dtype=jnp.int32) // codes_dim).reshape(1, d_in)

    return (w1_p.astype(jnp.bfloat16), b1_p, w2_p.astype(jnp.bfloat16), b2_p, colid)


def subclustering_forward(x, hard_assign, kparams, *, K, codes_dim, block_rows=512):
    """Pallas implementation of Subclustering_net_duplicating.forward."""
    w1, b1, w2, b2, colid = kparams
    d_in = codes_dim * K
    hpad = w1.shape[1]
    out_pad = w2.shape[1]

    x2d = x.reshape(-1, codes_dim).astype(jnp.float32)
    n = x2d.shape[0]

    # Row tile: big enough to pipeline well, aligned to the 8-sublane granule.
    tm = min(block_rows, _round_up(n, 8))
    n_pad = _round_up(n, tm)
    if n_pad != n:
        x2d = jnp.pad(x2d, ((0, n_pad - n), (0, 0)))
        hard_assign = jnp.pad(hard_assign.reshape(-1), (0, n_pad - n))
    ha = hard_assign.reshape(n_pad, 1).astype(jnp.int32)

    # VMEM budget: double-buffered row tiles + resident bf16 weights (+ margin).
    vmem_needed = (
        2 * tm * (codes_dim * 4 + 4 + out_pad * 4)
        + d_in * hpad * 2 + hpad * out_pad * 2
        + (hpad + out_pad + d_in) * 4
    )
    vmem_limit = int(min(max(2 * vmem_needed, 16 << 20), 48 << 20))

    kernel = functools.partial(_subcluster_kernel, K=K)
    out_padded = pl.pallas_call(
        kernel,
        out_shape=jax.ShapeDtypeStruct((n_pad, out_pad), jnp.float32),
        grid=(n_pad // tm,),
        in_specs=[
            pl.BlockSpec((tm, codes_dim), lambda i: (i, 0)),   # x rows (pipelined)
            pl.BlockSpec((tm, 1), lambda i: (i, 0)),           # hard_assign rows
            pl.BlockSpec((1, d_in), lambda i: (0, 0)),         # column-block ids (resident)
            pl.BlockSpec((d_in, hpad), lambda i: (0, 0)),      # w1 bf16 (resident)
            pl.BlockSpec((1, hpad), lambda i: (0, 0)),         # b1
            pl.BlockSpec((hpad, out_pad), lambda i: (0, 0)),   # w2 bf16 (resident)
            pl.BlockSpec((1, out_pad), lambda i: (0, 0)),      # b2
        ],
        out_specs=pl.BlockSpec((tm, out_pad), lambda i: (i, 0)),
        compiler_params=pltpu.CompilerParams(
            dimension_semantics=("parallel",),
            vmem_limit_bytes=vmem_limit,
        ),
    )(x2d, ha, colid, w1, b1, w2, b2)

    return out_padded[:n, : 2 * K]


def init_params(key, K, codes_dim, hidden_dim=HIDDEN_DIM):
    """Deterministic nn.Linear-style init + the block zeroing done in __init__."""
    d_in, h, out = codes_dim * K, hidden_dim * K, 2 * K
    k1, k2, k3, k4 = jax.random.split(key, 4)

    bound1 = 1.0 / jnp.sqrt(d_in)
    w1 = jax.random.uniform(k1, (h, d_in), jnp.float32, -bound1, bound1)  # torch (out, in)
    b1 = jax.random.uniform(k2, (h,), jnp.float32, -bound1, bound1)
    bound2 = 1.0 / jnp.sqrt(h)
    w2 = jax.random.uniform(k3, (out, h), jnp.float32, -bound2, bound2)
    b2 = jax.random.uniform(k4, (out,), jnp.float32, -bound2, bound2)

    # Reproduce the __init__ masking exactly: for output-row block k, columns
    # [0, codes_dim*(k+1)) of fc1 (resp. [0, hidden_dim*(k+1)) of fc2) are zeroed.
    row1 = jnp.arange(h)[:, None] // hidden_dim
    col1 = jnp.arange(d_in)[None, :] // codes_dim
    w1 = jnp.where(col1 <= row1, 0.0, w1)
    row2 = jnp.arange(out)[:, None] // 2
    col2 = jnp.arange(h)[None, :] // hidden_dim
    w2 = jnp.where(col2 <= row2, 0.0, w2)

    # Transpose to (in, out) so the matmul is x @ W.
    return w1.T, b1, w2.T, b2


def reference_forward(x, hard_assign, params, *, K, codes_dim, softmax_norm):
    """Pure-JAX f32 reference mirroring the PyTorch forward."""
    w1_t, b1, w2_t, b2 = params
    x2d = x.reshape(-1, codes_dim).astype(jnp.float32)
    n = x2d.shape[0]
    nb = jnp.zeros((n, K, codes_dim), jnp.float32)
    nb = nb.at[jnp.arange(n), hard_assign, :].set(x2d)
    x_in = nb.reshape(n, -1)
    h = jax.nn.relu(x_in @ w1_t + b1)
    logits = (h @ w2_t + b2) * softmax_norm
    return jax.nn.softmax(logits, axis=1)


if __name__ == "__main__":
    # synthetic hparams: init_k (K) and subcluster_softmax_norm
    K = 4
    codes_dim = 32
    softmax_norm = 0.5
    N = 16

    key = jax.random.PRNGKey(0)
    kx, kh, kp = jax.random.split(key, 3)
    x = jax.random.normal(kx, (N, codes_dim), jnp.float32)
    hard_assign = jax.random.randint(kh, (N,), 0, K, jnp.int32)
    params = init_params(kp, K, codes_dim)
    kparams = prepare_params(params, K=K, codes_dim=codes_dim, softmax_norm=softmax_norm)

    out = subclustering_forward(x, hard_assign, kparams, K=K, codes_dim=codes_dim)
    out = jax.block_until_ready(out)

    ref = reference_forward(
        x, hard_assign, params, K=K, codes_dim=codes_dim, softmax_norm=softmax_norm
    )
    assert out.shape == (N, 2 * K)
    # bf16 matmuls + approx reciprocal: compare against the f32 reference loosely.
    assert jnp.allclose(out, ref, atol=1e-2, rtol=0.0), "mismatch vs JAX reference"
    assert jnp.allclose(out.sum(axis=1), 1.0, atol=1e-2), "softmax rows must sum to 1"

    print("KERNEL_OK")
</pallas_src>

<mosaic_0001>
module attributes {stable_mosaic.version = 11 : i64} {
  func.func @_subcluster_kernel(%arg0: i32, %arg1: memref<16x32xf32, #tpu.memory_space<vmem>>, %arg2: memref<16x1xi32, #tpu.memory_space<vmem>>, %arg3: memref<1x128xi32, #tpu.memory_space<vmem>>, %arg4: memref<128x256xbf16, #tpu.memory_space<vmem>>, %arg5: memref<1x256xf32, #tpu.memory_space<vmem>>, %arg6: memref<256x128xbf16, #tpu.memory_space<vmem>>, %arg7: memref<1x128xf32, #tpu.memory_space<vmem>>, %arg8: memref<16x128xf32, #tpu.memory_space<vmem>>) attributes {dimension_semantics = [#tpu.dimension_semantics<parallel>], iteration_bounds = array<i64: 1>, scalar_prefetch = 0 : i64, scratch_operands = 0 : i64, tpu.core_type = #tpu.core_type<tc>, window_params = [{transform_indices = @transform_0, window_bounds = array<i64: 16, 32>}, {transform_indices = @transform_1, window_bounds = array<i64: 16, 1>}, {pipeline_mode = #tpu.pipeline_mode<synchronous>, transform_indices = @transform_2, window_bounds = array<i64: 1, 128>}, {pipeline_mode = #tpu.pipeline_mode<synchronous>, transform_indices = @transform_3, window_bounds = array<i64: 128, 256>}, {pipeline_mode = #tpu.pipeline_mode<synchronous>, transform_indices = @transform_4, window_bounds = array<i64: 1, 256>}, {pipeline_mode = #tpu.pipeline_mode<synchronous>, transform_indices = @transform_5, window_bounds = array<i64: 256, 128>}, {pipeline_mode = #tpu.pipeline_mode<synchronous>, transform_indices = @transform_6, window_bounds = array<i64: 1, 128>}, {transform_indices = @transform_7, window_bounds = array<i64: 16, 128>}]} {
    %c0 = arith.constant 0 : index
    %c0_0 = arith.constant 0 : index
    %0 = vector.load %arg1[%c0, %c0_0] : memref<16x32xf32, #tpu.memory_space<vmem>>, vector<16x32xf32>
    %1 = tpu.concatenate %0, %0, %0, %0 in 1 : vector<16x32xf32>, vector<16x32xf32>, vector<16x32xf32>, vector<16x32xf32> -> vector<16x128xf32>
    %c0_1 = arith.constant 0 : index
    %c0_2 = arith.constant 0 : index
    %2 = vector.load %arg3[%c0_1, %c0_2] : memref<1x128xi32, #tpu.memory_space<vmem>>, vector<1x128xi32>
    %c0_3 = arith.constant 0 : index
    %c0_4 = arith.constant 0 : index
    %3 = vector.load %arg2[%c0_3, %c0_4] : memref<16x1xi32, #tpu.memory_space<vmem>>, vector<16x1xi32>
    %4 = vector.broadcast %2 : vector<1x128xi32> to vector<16x128xi32>
    %5 = vector.broadcast %3 : vector<16x1xi32> to vector<16x128xi32>
    %6 = arith.cmpi eq, %4, %5 : vector<16x128xi32>
    %cst = arith.constant 0.000000e+00 : f32
    %7 = vector.broadcast %cst : f32 to vector<16x128xf32>
    %8 = arith.select %6, %1, %7 : vector<16x128xi1>, vector<16x128xf32>
    %9 = arith.truncf %8 : vector<16x128xf32> to vector<16x128xbf16>
    %c0_5 = arith.constant 0 : index
    %c0_6 = arith.constant 0 : index
    %10 = vector.load %arg4[%c0_5, %c0_6] : memref<128x256xbf16, #tpu.memory_space<vmem>>, vector<128x256xbf16>
    %cst_7 = arith.constant dense<0.000000e+00> : vector<16x256xf32>
    %11 = tpu.matmul %9, %10, %cst_7 {dimension_numbers = #tpu.dot_dimension_numbers<[1], [0], [0], [1], [0, 0, 1, 1], [], []>} : vector<16x128xbf16>, vector<128x256xbf16>, vector<16x256xf32> -> vector<16x256xf32>
    %c0_8 = arith.constant 0 : index
    %c0_9 = arith.constant 0 : index
    %12 = vector.load %arg5[%c0_8, %c0_9] : memref<1x256xf32, #tpu.memory_space<vmem>>, vector<1x256xf32>
    %13 = vector.broadcast %12 : vector<1x256xf32> to vector<16x256xf32>
    %14 = arith.addf %11, %13 : vector<16x256xf32>
    %cst_10 = arith.constant 0.000000e+00 : f32
    %15 = vector.broadcast %cst_10 : f32 to vector<16x256xf32>
    %16 = arith.maximumf %14, %15 : vector<16x256xf32>
    %17 = arith.truncf %16 : vector<16x256xf32> to vector<16x256xbf16>
    %c0_11 = arith.constant 0 : index
    %c0_12 = arith.constant 0 : index
    %18 = vector.load %arg6[%c0_11, %c0_12] : memref<256x128xbf16, #tpu.memory_space<vmem>>, vector<256x128xbf16>
    %cst_13 = arith.constant dense<0.000000e+00> : vector<16x128xf32>
    %19 = tpu.matmul %17, %18, %cst_13 {dimension_numbers = #tpu.dot_dimension_numbers<[1], [0], [0], [1], [0, 0, 1, 1], [], []>} : vector<16x256xbf16>, vector<256x128xbf16>, vector<16x128xf32> -> vector<16x128xf32>
    %c0_14 = arith.constant 0 : index
    %c0_15 = arith.constant 0 : index
    %20 = vector.load %arg7[%c0_14, %c0_15] : memref<1x128xf32, #tpu.memory_space<vmem>>, vector<1x128xf32>
    %21 = vector.broadcast %20 : vector<1x128xf32> to vector<16x128xf32>
    %22 = arith.addf %19, %21 : vector<16x128xf32>
    %cst_16 = arith.constant dense<0xFF800000> : vector<16xf32>
    %23 = vector.multi_reduction <maximumf>, %22, %cst_16 [1] : vector<16x128xf32> to vector<16xf32>
    %24 = vector.shape_cast %23 : vector<16xf32> to vector<16x1xf32>
    %25 = vector.broadcast %24 : vector<16x1xf32> to vector<16x128xf32>
    %26 = arith.subf %22, %25 : vector<16x128xf32>
    %27 = math.exp %26 : vector<16x128xf32>
    %cst_17 = arith.constant dense<0.000000e+00> : vector<16xf32>
    %28 = vector.multi_reduction <add>, %27, %cst_17 [1] : vector<16x128xf32> to vector<16xf32>
    %29 = vector.shape_cast %28 : vector<16xf32> to vector<16x1xf32>
    %30 = tpu.reciprocal %29 {approx = true} : vector<16x1xf32> -> vector<16x1xf32>
    %31 = vector.broadcast %30 : vector<16x1xf32> to vector<16x128xf32>
    %32 = arith.mulf %27, %31 : vector<16x128xf32>
    %c0_18 = arith.constant 0 : index
    %c0_19 = arith.constant 0 : index
    %33 = vector.load %arg8[%c0_18, %c0_19] : memref<16x128xf32, #tpu.memory_space<vmem>>, vector<16x128xf32>
    tpu.vector_store %arg8[%c0_18, %c0_19], %32 {strides = array<i32>} : memref<16x128xf32, #tpu.memory_space<vmem>>, vector<16x128xf32>,
    return
  }
  func.func @transform_0(%arg0: i32) -> (i32, i32) {
    %c0_i32 = arith.constant 0 : i32
    %c0_i32_0 = arith.constant 0 : i32
    return %arg0, %c0_i32 : i32, i32
  }
  func.func @transform_1(%arg0: i32) -> (i32, i32) {
    %c0_i32 = arith.constant 0 : i32
    %c0_i32_0 = arith.constant 0 : i32
    return %arg0, %c0_i32 : i32, i32
  }
  func.func @transform_2(%arg0: i32) -> (i32, i32) {
    %c0_i32 = arith.constant 0 : i32
    %c0_i32_0 = arith.constant 0 : i32
    %c0_i32_1 = arith.constant 0 : i32
    return %c0_i32, %c0_i32_0 : i32, i32
  }
  func.func @transform_3(%arg0: i32) -> (i32, i32) {
    %c0_i32 = arith.constant 0 : i32
    %c0_i32_0 = arith.constant 0 : i32
    %c0_i32_1 = arith.constant 0 : i32
    return %c0_i32, %c0_i32_0 : i32, i32
  }
  func.func @transform_4(%arg0: i32) -> (i32, i32) {
    %c0_i32 = arith.constant 0 : i32
    %c0_i32_0 = arith.constant 0 : i32
    %c0_i32_1 = arith.constant 0 : i32
    return %c0_i32, %c0_i32_0 : i32, i32
  }
  func.func @transform_5(%arg0: i32) -> (i32, i32) {
    %c0_i32 = arith.constant 0 : i32
    %c0_i32_0 = arith.constant 0 : i32
    %c0_i32_1 = arith.constant 0 : i32
    return %c0_i32, %c0_i32_0 : i32, i32
  }
  func.func @transform_6(%arg0: i32) -> (i32, i32) {
    %c0_i32 = arith.constant 0 : i32
    %c0_i32_0 = arith.constant 0 : i32
    %c0_i32_1 = arith.constant 0 : i32
    return %c0_i32, %c0_i32_0 : i32, i32
  }
  func.func @transform_7(%arg0: i32) -> (i32, i32) {
    %c0_i32 = arith.constant 0 : i32
    %c0_i32_0 = arith.constant 0 : i32
    return %arg0, %c0_i32 : i32, i32
  }
}

</mosaic_0001>

<bundles_post_ra>
// kernel: tpu_custom_call.1
= control target key start
LH: loop header
LB: loop body
LE: loop exit
PB: predicated region body
PF: predicated region fallthrough
CT: control target
= control target key end

     0   :  { %12 = vsyncpa [#allocation3], 0  ;;  %s769_s0 = inlined_call_operand.vmem [shape: f32[16,32], index: 0, kind: input, shape index: {}]   ;;  %s770_s1 = inlined_call_operand.vmem [shape: s32[16,1], index: 1, kind: input, shape index: {}]   ;;  %s771_s2 = inlined_call_operand.vmem [shape: s32[1,128], index: 2, kind: input, shape index: {}]   ;;  %s772_s3 = inlined_call_operand.hbm [shape: bf16[128,256], index: 3, kind: input, shape index: {}]   ;;  %s773_s4 = inlined_call_operand.vmem [shape: f32[1,256], index: 4, kind: input, shape index: {}]   ;;  %s774_s5 = inlined_call_operand.hbm [shape: bf16[256,128], index: 5, kind: input, shape index: {}]   ;;  %s775_s6 = inlined_call_operand.vmem [shape: f32[1,128], index: 6, kind: input, shape index: {}]   ;;  %s776_s7 = inlined_call_operand.hbm [shape: f32[16,128], index: 7, kind: output, shape index: {}]  }
   0x1   :  { %13 = vsyncpa [#allocation6], 0 }
   0x2   :  { %14 = vsyncpa [#allocation4], 0  ;;  %s675_s24 = smov [#allocation2]  }
   0x3   :  { %s26_s25 = sshll.u32 %s675_s24, 4  ;;  %s27_s25 = int_to_ptr.vmem [resolvable:$true] %s26_s25 }
   0x4   :  { %s617_s26 = scalar_lea.vmem %s27_s25, 2048  ;;  %p622_p1 = scmp.lt.s32.totalorder %s27_s25, %s27_s25 }
   0x5   :  { %p618_p0 = scmp.ne.s32.totalorder %s27_s25, %s617_s26  ;;  %p623_p2 = scmp.lt.s32.totalorder %s617_s26, %s617_s26 }
   0x7   :  { %p624_p3 = por %p623_p2, %p622_p1 }
   0x9   :  { %p625_p4 = pnand %p624_p3, %p618_p0 }
   0xb   :  { %628 = shalt.err (!%p625_p4)
}
   0xc   :  { %s676_s27 = smov 128   ;;  %s677_s28 = smov 8  }
   0xd   :  { %32 = dma.hbm_to_vmem [thread:$0]  %s772_s3, 2048, %s27_s25, [#allocation3], %s676_s27, %s676_s27, %s677_s28  }
   0xe   :  { %s678_s8 = smov [#allocation5]  }
   0xf   :  { %s40_s9 = sshll.u32 %s678_s8, 4  ;;  %s41_s9 = int_to_ptr.vmem [resolvable:$true] %s40_s9 }
  0x10   :  { %s637_s10 = scalar_lea.vmem %s41_s9, 2048  ;;  %p642_p6 = scmp.lt.s32.totalorder %s41_s9, %s41_s9 }
  0x11   :  { %p638_p5 = scmp.ne.s32.totalorder %s41_s9, %s637_s10  ;;  %p643_p7 = scmp.lt.s32.totalorder %s637_s10, %s637_s10 }
  0x13   :  { %p644_p8 = por %p643_p7, %p642_p6 }
  0x15   :  { %p645_p9 = pnand %p644_p8, %p638_p5 }
  0x17   :  { %648 = shalt.err (!%p645_p9)
}
  0x18   :  { %s679_s11 = smov 64   ;;  %s680_s12 = smov 4  }
  0x19   :  { %46 = dma.hbm_to_vmem [thread:$0]  %s774_s5, 2048, %s41_s9, [#allocation6], %s679_s11, %s679_s11, %s680_s12  }
  0x1a   :  { %669 = dma.done.wait [#allocation3], 2048  }
  0x1b   :  { %670 = vsyncadd [#allocation3], 4294965248 }
  0x1c   :  { %671 = dma.done.wait [#allocation6], 2048  }
  0x1d   :  { %672 = vsyncadd [#allocation6], 4294965248  ;;  %v681_v0 = vmov 0   ;;  %v88_v1 = vld [vmem:[%s770_s1] sm:$0xff]  ;;  %v89_v2 = vld [vmem:[%s770_s1 + $0x8] sm:$0xff]  ;;  %s682_s21 = smov 32   ;;  %v123_v57 = vlaneseq }
  0x1e   :  { %545 = vset.pattern.permute.xlu0 %v681_v0  ;;  %245 = vmatprep.mubr.bf16.mxu0 %v681_v0  ;;  %v743_v3 = vld [vmem:[%s769_s0] sm:$0xff]  ;;  %v748_v4 = vld [vmem:[%s769_s0 + $0x8] sm:$0xff]  ;;  %v561_v6 = vld [vmem:[#allocation2 + $0x74] ss:$8 sps:$4 sm:$0xff]   ;;  %s683_s1 = smov 96   ;;  %vm78_vm0 = vcmask 261120  }
  0x1f   :  { %95 = vperm.xlu0 %545, %v88_v1   ;;  %v546_v5 = vpack.i.bf16 %v748_v4, %v743_v3  ;;  %v563_v7 = vld [vmem:[#allocation2 + $0x70] ss:$8 sps:$4 sm:$0xff]   ;;  %v564_v8 = vld [vmem:[#allocation2 + $0x64] ss:$8 sps:$4 sm:$0xff]   ;;  %213 = vmatprep.subr.bf16.mxu0 %v561_v6  ;;  %v566_v9 = vld [vmem:[#allocation2 + $0x60] ss:$8 sps:$4 sm:$0xff]  }
  0x20   :  { %214 = vmatpush1.bf16.msra.mxu0 %v563_v7  ;;  %v567_v10 = vld [vmem:[#allocation2 + $0x54] ss:$8 sps:$4 sm:$0xff]   ;;  %v569_v11 = vld [vmem:[#allocation2 + $0x50] ss:$8 sps:$4 sm:$0xff]   ;;  %v570_v12 = vld [vmem:[#allocation2 + $0x44] ss:$8 sps:$4 sm:$0xff]  }
  0x21   :  { %547 = vrot.lane.b32.xlu1 %v546_v5, %s682_s21  ;;  %215 = vmatprep.subr.bf16.mxu0 %v564_v8  ;;  %v572_v13 = vld [vmem:[#allocation2 + $0x40] ss:$8 sps:$4 sm:$0xff]   ;;  %v573_v14 = vld [vmem:[#allocation2 + $0x34] ss:$8 sps:$4 sm:$0xff]   ;;  %v575_v17 = vld [vmem:[#allocation2 + $0x30] ss:$8 sps:$4 sm:$0xff]  }
  0x22   :  { %v585_v15 = vld [vmem:[#allocation5 + $0x78] sm:$0xff]   ;;  %v587_v18 = vld [vmem:[#allocation5 + $0x70] sm:$0xff]   ;;  %v589_v20 = vld [vmem:[#allocation5 + $0x68] sm:$0xff]   ;;  %vm81_vm1 = vcmask 523264   ;;  %vm84_vm2 = vcmask 785408   ;;  %v124_v58 = vshrl.u32 %v123_v57, 7 }
  0x23   :  { %98 = vperm.xlu0 %545, %v89_v2   ;;  %v586_v16 = vld [vmem:[#allocation5 + $0x38] sm:$0xff]   ;;  %513 = vmatprep.subr.bf16.mxu1 %v585_v15  ;;  %v588_v19 = vld [vmem:[#allocation5 + $0x30] sm:$0xff]   ;;  %v576_v21 = vld [vmem:[#allocation2 + $0x24] ss:$8 sps:$4 sm:$0xff]  }
  0x24   :  { %216 = vmatpush1.bf16.msra.mxu0 %v566_v9  ;;  %514 = vmatpush3.bf16.msra.mxu1 %v586_v16  ;;  %v578_v22 = vld [vmem:[#allocation2 + $0x20] ss:$8 sps:$4 sm:$0xff]   ;;  %v579_v25 = vld [vmem:[#allocation2 + $0x14] ss:$8 sps:$4 sm:$0xff]   ;;  %v581_v27 = vld [vmem:[#allocation2 + $0x10] ss:$8 sps:$4 sm:$0xff]  }
  0x25   :  { %552 = vrot.lane.b32.xlu1 %v546_v5, %s679_s11  ;;  %217 = vmatprep.subr.bf16.mxu0 %v567_v10  ;;  %v590_v23 = vld [vmem:[#allocation5 + $0x28] sm:$0xff]   ;;  %v591_v24 = vld [vmem:[#allocation5 + $0x60] sm:$0xff]   ;;  %v593_v28 = vld [vmem:[#allocation5 + $0x58] sm:$0xff]   ;;  %v129_v59 = vsub.s32 1, %v124_v58  ;;  %v125_v60 = vsub.s32 0, %v124_v58 }
  0x26   :  { %515 = vmatprep.subr.bf16.mxu1 %v587_v18  ;;  %v592_v26 = vld [vmem:[#allocation5 + $0x20] sm:$0xff]   ;;  %v594_v30 = vld [vmem:[#allocation5 + $0x18] sm:$0xff]   ;;  %v595_v51 = vld [vmem:[#allocation5 + $0x50] sm:$0xff]  }
  0x27   :  { %557 = vrot.lane.b32.xlu0 %v546_v5, %s683_s1  ;;  %v582_v29 = vld [vmem:[#allocation2 + $0x4] ss:$8 sps:$4 sm:$0xff]   ;;  %v584_v31 = vld [vmem:[#allocation2] ss:$8 sps:$4 sm:$0xff]   ;;  %v596_v52 = vld [vmem:[#allocation5 + $0x10] sm:$0xff]  }
  0x28   :  { %218 = vmatpush1.bf16.msra.mxu0 %v569_v11  ;;  %516 = vmatpush3.bf16.msra.mxu1 %v588_v19  ;;  %v476_v43 = vld [vmem:[%s771_s2] ss:$0 sm:$0xff]  ;;  %v597_v53 = vld [vmem:[#allocation5 + $0x48] sm:$0xff]  }
  0x29   :  { %219 = vmatprep.subr.bf16.mxu0 %v570_v12  ;;  %517 = vmatprep.subr.bf16.mxu1 %v589_v20  ;;  %v598_v54 = vld [vmem:[#allocation5 + $0x8] sm:$0xff]   ;;  %v599_v55 = vld [vmem:[#allocation5 + $0x40] sm:$0xff]  }
  0x2a   :  { %v600_v56 = vld [vmem:[#allocation5] sm:$0xff]  }
  0x2b   :  { %v121_v61 = vld [vmem:[%s773_s4] sm:$0x3] }
  0x2c   :  { %220 = vmatpush1.bf16.msra.mxu0 %v572_v13  ;;  %518 = vmatpush3.bf16.msra.mxu1 %v590_v23  ;;  %v130_v63 = vrot.slane %v121_v61, %v129_v59  ;;  %v126_v0 = vrot.slane %v121_v61, %v125_v60  ;;  %v496_v16 = vld [vmem:[%s775_s6] ss:$0 sm:$0xff]  ;;  %s684_s6 = smov [#allocation7]  }
  0x2d   :  { %221 = vmatprep.subr.bf16.mxu0 %v573_v14  ;;  %519 = vmatprep.subr.bf16.mxu1 %v591_v24  ;;  %s463_s25 = sshll.u32 %s684_s6, 4  ;;  %s464_s25 = int_to_ptr.vmem [resolvable:$true] %s463_s25 }
  0x2e   :  { %s649_s26 = scalar_lea.vmem %s464_s25, 256  ;;  %p654_p11 = scmp.lt.s32.totalorder %s464_s25, %s464_s25 }
  0x2f   :  { %p650_p10 = scmp.ne.s32.totalorder %s464_s25, %s649_s26  ;;  %p655_p12 = scmp.lt.s32.totalorder %s649_s26, %s649_s26 }
  0x30   :  { %222 = vmatpush1.bf16.msra.mxu0 %v575_v17  ;;  %520 = vmatpush3.bf16.msra.mxu1 %v592_v26 }
  0x31   :  { %223 = vmatprep.subr.bf16.mxu0 %v576_v21  ;;  %521 = vmatprep.subr.bf16.mxu1 %v593_v28  ;;  %p656_p13 = por %p655_p12, %p654_p11 }
  0x33   :  { %p657_p0 = pnand %p656_p13, %p650_p10 }
  0x34   :  { %224 = vmatpush1.bf16.msra.mxu0 %v578_v22  ;;  %522 = vmatpush3.bf16.msra.mxu1 %v594_v30 }
  0x35   :  { %225 = vmatprep.subr.bf16.mxu0 %v579_v25  ;;  %523 = vmatprep.subr.bf16.mxu1 %v595_v51 }
  0x38   :  { %226 = vmatpush1.bf16.msra.mxu0 %v581_v27  ;;  %524 = vmatpush3.bf16.msra.mxu1 %v596_v52 }
  0x39   :  { %227 = vmatprep.subr.bf16.mxu0 %v582_v29  ;;  %525 = vmatprep.subr.bf16.mxu1 %v597_v53 }
  0x3c   :  { %228 = vmatpush1.bf16.msra.mxu0 %v584_v31  ;;  %526 = vmatpush3.bf16.msra.mxu1 %v598_v54 }
  0x3d   :  { %527 = vmatprep.subr.bf16.mxu1 %v599_v55 }
  0x40   :  { %528 = vmatpush3.bf16.msra.mxu1 %v600_v56 }
  0x93   :  { %v548_v32 = vpop.permute.xlu1 %547 }
  0x94   :  { %v550_v34 = vunpack.i.h.bf16 %v548_v32  ;;  %v549_v35 = vunpack.i.l.bf16 %v548_v32 }
  0x96   :  { %v80_v40 = vsel %vm78_vm0, %v748_v4, %v550_v34  ;;  %v79_v41 = vsel %vm78_vm0, %v743_v3, %v549_v35 }
  0x97   :  { %v553_v36 = vpop.permute.xlu1 %552 }
  0x98   :  { %v555_v38 = vunpack.i.h.bf16 %v553_v36  ;;  %v554_v39 = vunpack.i.l.bf16 %v553_v36 }
  0x9a   :  { %v96_v33 = vpop.permute.xlu0 %95  ;;  %v82_v46 = vsel %vm81_vm1, %v79_v41, %v554_v39  ;;  %v83_v47 = vsel %vm81_vm1, %v80_v40, %v555_v38 }
  0x9b   :  { %vm100_vm4 = vcmp.eq.s32.totalorder %v476_v43, %v96_v33 }
  0x9e   :  { %v99_v37 = vpop.permute.xlu0 %98 }
  0x9f   :  { %vm101_vm3 = vcmp.eq.s32.totalorder %v476_v43, %v99_v37 }
  0xa0   :  { %vm493_vm5 = vmpackc.low %vm101_vm3, %vm100_vm4 }
  0xa2   :  { %v558_v42 = vpop.permute.xlu0 %557 }
  0xa3   :  { %v560_v44 = vunpack.i.h.bf16 %v558_v42  ;;  %v559_v45 = vunpack.i.l.bf16 %v558_v42 }
  0xa5   :  { %v85_v48 = vsel %vm84_vm2, %v82_v46, %v559_v45  ;;  %v86_v49 = vsel %vm84_vm2, %v83_v47, %v560_v44 }
  0xa6   :  { %v494_v50 = vpack.c.bf16 %v86_v49, %v85_v48 }
  0xa8   :  { %495 = vmatmul.mubr.msk.bf16.vlgmr.msra.gmra.mxu0 %vm493_vm5, %v494_v50 }
 0x168   :  { %v247_v62 = vpop.f32.mrf.mxu0 }
 0x169   :  { %v248_v5 = vadd.f32 %v247_v62, %v126_v0 }
 0x16a   :  { %v249_v1 = vpop.f32.mrf.mxu0 }
 0x16b   :  { %v250_v3 = vadd.f32 %v249_v1, %v130_v63  ;;  %v256_v11 = vmax.f32 %v248_v5, 0.0 }
 0x16c   :  { %v251_v2 = vpop.f32.mrf.mxu0 }
 0x16d   :  { %v252_v4 = vadd.f32 %v251_v2, %v126_v0  ;;  %v257_v9 = vmax.f32 %v250_v3, 0.0 }
 0x16e   :  { %v253_v6 = vpop.f32.mrf.mxu0 }
 0x16f   :  { %v254_v7 = vadd.f32 %v253_v6, %v130_v63  ;;  %v258_v8 = vmax.f32 %v252_v4, 0.0 }
 0x171   :  { %v259_v10 = vmax.f32 %v254_v7, 0.0  ;;  %v260_v13 = vpack.c.bf16 %v258_v8, %v256_v11 }
 0x173   :  { %v261_v12 = vpack.c.bf16 %v259_v10, %v257_v9 }
 0x175   :  { %429 = vmatprep.mubr.bf16.mxu1 %v261_v12 }
 0x176   :  { %430 = vmatmul.mubr.bf16.vlgmr.msra.gmra.mxu1 %v260_v13 }
 0x236   :  { %v529_v14 = vpop.f32.mrf.mxu1 }
 0x238   :  { %v530_v15 = vpop.f32.mrf.mxu1 }
 0x239   :  { %v531_v17 = vadd.f32 %v530_v15, %v529_v14 }
 0x23a   :  { %v532_v18 = vpop.f32.mrf.mxu1 }
 0x23b   :  { %v432_v19 = vadd.f32 %v531_v17, %v496_v16 }
 0x23c   :  { %v533_v20 = vpop.f32.mrf.mxu1 }
 0x23d   :  { %v534_v21 = vadd.f32 %v533_v20, %v532_v18  ;;  %438 = vmax.xlane.f32.xlu1 %v432_v19 }
 0x23f   :  { %v435_v22 = vadd.f32 %v534_v21, %v496_v16 }
 0x241   :  { %440 = vmax.xlane.f32.xlu0 %v435_v22 }
 0x2c6   :  { %v439_v23 = vpop.xlane.xlu1 %438 }
 0x2c7   :  { %v442_v24 = vsub.f32 %v432_v19, %v439_v23 }
 0x2c9   :  { %v444_v25 = vmul.f32 1.442695, %v442_v24 }
 0x2ca   :  { %v441_v26 = vpop.xlane.xlu0 %440 }
 0x2cb   :  { %601 = vpow2.f32 %v444_v25  ;;  %v443_v27 = vsub.f32 %v435_v22, %v441_v26 }
 0x2cd   :  { %v446_v28 = vmul.f32 1.442695, %v443_v27 }
 0x2cf   :  { %603 = vpow2.f32 %v446_v28 }
 0x2d8   :  { %v602_v29 = vpop.eup %601 }
 0x2d9   :  { %448 = vadd.xlane.f32.xlu0 %v602_v29 }
 0x2dc   :  { %v604_v30 = vpop.eup %603 }
 0x2dd   :  { %450 = vadd.xlane.f32.xlu1 %v604_v30 }
 0x362   :  { %v449_v31 = vpop.xlane.xlu0 %448 }
 0x363   :  { %605 = vrcp.f32 %v449_v31 }
 0x366   :  { %v451_v32 = vpop.xlane.xlu1 %450 }
 0x367   :  { %607 = vrcp.f32 %v451_v32 }
 0x370   :  { %v606_v33 = vpop.eup %605 }
 0x371   :  { %v454_v34 = vmul.f32 %v606_v33, %v602_v29 }
 0x373   :  { %456 = vst [vmem:[#allocation7] sm:$0xff] %v454_v34 }
 0x374   :  { %v608_v35 = vpop.eup %607 }
 0x375   :  { %v455_v36 = vmul.f32 %v608_v35, %v604_v30 }
 0x377   :  { %457 = vst [vmem:[#allocation7 + $0x8] sm:$0xff] %v455_v36 }
 0x378   :  { %660 = shalt.err (!%p657_p0)
}
 0x379   :  { %469 = dma.vmem_to_hbm [thread:$0]  %s464_s25, 256, %s776_s7, [#allocation4], %s676_s27, %s676_s27, %s677_s28  }
 0x37a   :  { %673 = dma.done.wait [#allocation4], 256  }
 0x37b   :  { %674 = vsyncadd [#allocation4], 4294967040 }
 0x37c   :  { %473 = vsyncpa [#allocation3], 1 }
 0x37d   :  { %474 = vsyncpa [#allocation6], 1 }
 0x37e   :  { %475 = vsyncpa [#allocation4], 1 }

</bundles_post_ra>
